<compile_context>
chip_gen: v5e
topology: v5e:2x2
jax: 0.10.0
libtpu: 0.0.40
codegen_flags: <defaults>
</compile_context>

<pallas_src>
import functools

import jax
import jax.numpy as jnp
from jax.experimental import pallas as pl
from jax.experimental.pallas import tpu as pltpu


def _round_up(x, m):
    return ((x + m - 1) // m) * m


def _conv1x1_bn_kernel(x_ref, w_ref, shift_ref, o_ref, *, compute_dtype):
    # x_ref:     (C_in, Ts)   spatial tile of one batch image (NCHW orientation)
    # w_ref:     (C_out, C_in) 1x1-conv weight with BN scale pre-folded
    # shift_ref: (C_out, 1)   per-channel shift (conv bias + BN terms folded in)
    # o_ref:     (C_out, Ts)  lane-dense output tile
    x = x_ref[...]
    if compute_dtype is not None and x.dtype != compute_dtype:
        x = x.astype(compute_dtype)  # feed the MXU bf16; accumulate in f32
    acc = jnp.dot(w_ref[...], x, preferred_element_type=jnp.float32)
    o_ref[...] = (acc + shift_ref[...]).astype(o_ref.dtype)


def _pick_spatial_tile(s, c_in, c_out, x_itemsize, max_tile, vmem_tile_budget):
    """Largest multiple-of-128 spatial tile fitting the VMEM tile budget."""
    # Double-buffered x tile + out tile must fit the budget.
    cap = vmem_tile_budget // (2 * x_itemsize * (c_in + c_out))
    cap = max(128, (cap // 128) * 128)
    ts = min(max_tile, cap, _round_up(s, 128))
    return max(128, (ts // 128) * 128)


def conv1x1_bn_pallas(x3, w_mat, shift, *, compute_dtype=jnp.bfloat16,
                      max_tile=2048, vmem_tile_budget=16 * 1024 * 1024):
    """x3: (N, C_in, S) activations; w_mat: (C_out, C_in); shift: (C_out, 1)."""
    n, c_in, s = x3.shape
    c_out = w_mat.shape[0]

    ts = _pick_spatial_tile(s, c_in, c_out, x3.dtype.itemsize,
                            max_tile, vmem_tile_budget)
    s_pad = _round_up(s, ts)
    if s_pad != s:
        # One-time pad so the grid divides evenly; padded columns are sliced off.
        x3 = jnp.pad(x3, ((0, 0), (0, 0), (0, s_pad - s)))

    grid = (n, s_pad // ts)
    kernel = functools.partial(_conv1x1_bn_kernel, compute_dtype=compute_dtype)

    out = pl.pallas_call(
        kernel,
        out_shape=jax.ShapeDtypeStruct((n, c_out, s_pad), x3.dtype),
        grid_spec=pltpu.PrefetchScalarGridSpec(
            num_scalar_prefetch=0,
            grid=grid,
            in_specs=[
                # Activation tile: batch dim squeezed, spatial is the lane dim.
                pl.BlockSpec((None, c_in, ts), lambda i, j: (i, 0, j)),
                # Weight / shift are grid-invariant (constant index_map), so
                # they are fetched once and stay resident across the grid.
                # TODO(synk): pipeline_mode=pl.Buffered(1) on these two would
                # drop the redundant second buffer if VMEM gets tight on v7x.
                pl.BlockSpec((c_out, c_in), lambda i, j: (0, 0)),
                pl.BlockSpec((c_out, 1), lambda i, j: (0, 0)),
            ],
            out_specs=pl.BlockSpec((None, c_out, ts), lambda i, j: (i, 0, j)),
        ),
        compiler_params=pltpu.CompilerParams(
            dimension_semantics=("parallel", "parallel"),
            vmem_limit_bytes=48 * 1024 * 1024,
        ),
    )(x3, w_mat, shift)

    if s_pad != s:
        out = out[:, :, :s]
    return out


class MaybeApply1x1:
    """JAX/Pallas port of the PyTorch MaybeApply1x1 module (NCHW I/O)."""

    def __init__(self, in_channels, out_channels, use_bn=False, *, key=None,
                 compute_dtype=jnp.bfloat16):
        self.in_channels = in_channels
        self.out_channels = out_channels
        self.use_bn = use_bn
        self.compute_dtype = compute_dtype
        self.has_conv = in_channels != out_channels
        if not self.has_conv:
            return

        if key is None:
            key = jax.random.PRNGKey(42)
        kw, kb = jax.random.split(key)
        # Deterministic synthetic params (Conv2d 1x1: weight (C_out, C_in), bias (C_out,))
        bound = 1.0 / (in_channels ** 0.5)
        conv_w = jax.random.uniform(kw, (out_channels, in_channels),
                                    jnp.float32, -bound, bound)
        conv_b = jax.random.uniform(kb, (out_channels,), jnp.float32,
                                    -bound, bound)

        if use_bn:
            # BatchNorm2d eval-mode params (PyTorch defaults: gamma=1, beta=0,
            # running_mean=0, running_var=1, eps=1e-5).
            # TODO(synk): training-mode BN (batch statistics) not implemented;
            # eval-mode running stats are used, matching .eval() inference.
            eps = 1e-5
            gamma = jnp.ones((out_channels,), jnp.float32)
            beta = jnp.zeros((out_channels,), jnp.float32)
            running_mean = jnp.zeros((out_channels,), jnp.float32)
            running_var = jnp.ones((out_channels,), jnp.float32)
            scale = gamma / jnp.sqrt(running_var + eps)
            shift = beta + (conv_b - running_mean) * scale
            w_eff = conv_w * scale[:, None]      # fold BN scale into the weight
        else:
            shift = conv_b
            w_eff = conv_w                       # no scale path when use_bn=False

        w_dtype = compute_dtype if compute_dtype is not None else jnp.float32
        self.w_mat = w_eff.astype(w_dtype)                        # (C_out, C_in)
        self.shift = shift.reshape(out_channels, 1).astype(jnp.float32)

    def __call__(self, x):
        # x: NCHW, like the PyTorch module.
        if not self.has_conv:
            return x
        n, c, h, w = x.shape
        assert c == self.in_channels
        x3 = x.reshape(n, c, h * w)   # contiguous view of NCHW; no transpose
        y3 = conv1x1_bn_pallas(x3, self.w_mat, self.shift,
                               compute_dtype=self.compute_dtype)
        return y3.reshape(n, self.out_channels, h, w)


if __name__ == "__main__":
    key = jax.random.PRNGKey(0)
    k_x, k_p, k_x2, k_p2 = jax.random.split(key, 4)

    # Case 1: channels differ -> Pallas 1x1 conv + BN (bf16 MXU, f32 accumulate).
    N, C_IN, H, W = 2, 4, 16, 16
    C_OUT = 8
    x = jax.random.normal(k_x, (N, C_IN, H, W), jnp.float32)
    mod = MaybeApply1x1(C_IN, C_OUT, use_bn=True, key=k_p)
    y = jax.block_until_ready(mod(x))
    assert y.shape == (N, C_OUT, H, W)

    # Reference with the same bf16 operand rounding, f32 accumulation.
    w_ref = mod.w_mat.astype(jnp.float32)
    x_ref = x.astype(jnp.bfloat16).astype(jnp.float32)
    ref = (jnp.einsum("oc,nchw->nohw", w_ref, x_ref)
           + mod.shift.reshape(1, C_OUT, 1, 1))
    assert jnp.allclose(y, ref, atol=5e-3, rtol=5e-3), "conv+bn mismatch vs reference"

    # Case 2: channels equal -> identity passthrough (no kernel launched).
    mod_id = MaybeApply1x1(C_IN, C_IN)
    y_id = jax.block_until_ready(mod_id(x))
    assert jnp.array_equal(y_id, x)

    # Case 3: ragged spatial size (H*W not a multiple of 128) + f32 compute path.
    N3, C_IN3, C_OUT3, H3, W3 = 2, 5, 16, 9, 11    # S = 99 -> padded to 128 internally
    x_r = jax.random.normal(k_x2, (N3, C_IN3, H3, W3), jnp.float32)
    mod3 = MaybeApply1x1(C_IN3, C_OUT3, use_bn=False, key=k_p2,
                         compute_dtype=jnp.float32)
    y3 = jax.block_until_ready(mod3(x_r))
    ref3 = (jnp.einsum("oc,nchw->nohw", mod3.w_mat, x_r,
                       precision=jax.lax.Precision.HIGHEST)
            + mod3.shift.reshape(1, C_OUT3, 1, 1))
    assert y3.shape == (N3, C_OUT3, H3, W3)
    assert jnp.allclose(y3, ref3, atol=5e-3, rtol=5e-3), "ragged-spatial mismatch"

    print("KERNEL_OK")
</pallas_src>

<mosaic_0001>
module attributes {stable_mosaic.version = 11 : i64} {
  func.func @_conv1x1_bn_kernel(%arg0: i32, %arg1: i32, %arg2: memref<1x4x256xf32, #tpu.memory_space<vmem>>, %arg3: memref<8x4xbf16, #tpu.memory_space<vmem>>, %arg4: memref<8x1xf32, #tpu.memory_space<vmem>>, %arg5: memref<1x8x256xf32, #tpu.memory_space<vmem>>) attributes {dimension_semantics = [#tpu.dimension_semantics<parallel>, #tpu.dimension_semantics<parallel>], iteration_bounds = array<i64: 2, 1>, scalar_prefetch = 0 : i64, scratch_operands = 0 : i64, tpu.core_type = #tpu.core_type<tc>, window_params = [{transform_indices = @transform_0, window_bounds = array<i64: 1, 4, 256>}, {pipeline_mode = #tpu.pipeline_mode<synchronous>, transform_indices = @transform_1, window_bounds = array<i64: 8, 4>}, {pipeline_mode = #tpu.pipeline_mode<synchronous>, transform_indices = @transform_2, window_bounds = array<i64: 8, 1>}, {transform_indices = @transform_3, window_bounds = array<i64: 1, 8, 256>}]} {
    %c0 = arith.constant 0 : index
    %c0_0 = arith.constant 0 : index
    %c0_1 = arith.constant 0 : index
    %0 = vector.load %arg2[%c0, %c0_0, %c0_1] : memref<1x4x256xf32, #tpu.memory_space<vmem>>, vector<1x4x256xf32>
    %1 = vector.shape_cast %0 : vector<1x4x256xf32> to vector<4x256xf32>
    %2 = arith.truncf %1 : vector<4x256xf32> to vector<4x256xbf16>
    %c0_2 = arith.constant 0 : index
    %c0_3 = arith.constant 0 : index
    %3 = vector.load %arg3[%c0_2, %c0_3] : memref<8x4xbf16, #tpu.memory_space<vmem>>, vector<8x4xbf16>
    %cst = arith.constant dense<0.000000e+00> : vector<8x256xf32>
    %4 = tpu.matmul %3, %2, %cst {dimension_numbers = #tpu.dot_dimension_numbers<[1], [0], [0], [1], [0, 0, 1, 1], [], []>} : vector<8x4xbf16>, vector<4x256xbf16>, vector<8x256xf32> -> vector<8x256xf32>
    %c0_4 = arith.constant 0 : index
    %c0_5 = arith.constant 0 : index
    %5 = vector.load %arg4[%c0_4, %c0_5] : memref<8x1xf32, #tpu.memory_space<vmem>>, vector<8x1xf32>
    %6 = vector.broadcast %5 : vector<8x1xf32> to vector<8x256xf32>
    %7 = arith.addf %4, %6 : vector<8x256xf32>
    %c0_6 = arith.constant 0 : index
    %c0_7 = arith.constant 0 : index
    %c0_8 = arith.constant 0 : index
    %8 = vector.load %arg5[%c0_6, %c0_7, %c0_8] : memref<1x8x256xf32, #tpu.memory_space<vmem>>, vector<1x8x256xf32>
    %9 = vector.shape_cast %8 : vector<1x8x256xf32> to vector<8x256xf32>
    %10 = vector.shape_cast %7 : vector<8x256xf32> to vector<1x8x256xf32>
    tpu.vector_store %arg5[%c0_6, %c0_7, %c0_8], %10 {strides = array<i32>} : memref<1x8x256xf32, #tpu.memory_space<vmem>>, vector<1x8x256xf32>,
    return
  }
  func.func @transform_0(%arg0: i32, %arg1: i32) -> (i32, i32, i32) {
    %c0_i32 = arith.constant 0 : i32
    %c0_i32_0 = arith.constant 0 : i32
    return %arg0, %c0_i32, %arg1 : i32, i32, i32
  }
  func.func @transform_1(%arg0: i32, %arg1: i32) -> (i32, i32) {
    %c0_i32 = arith.constant 0 : i32
    %c0_i32_0 = arith.constant 0 : i32
    %c0_i32_1 = arith.constant 0 : i32
    return %c0_i32, %c0_i32_0 : i32, i32
  }
  func.func @transform_2(%arg0: i32, %arg1: i32) -> (i32, i32) {
    %c0_i32 = arith.constant 0 : i32
    %c0_i32_0 = arith.constant 0 : i32
    %c0_i32_1 = arith.constant 0 : i32
    return %c0_i32, %c0_i32_0 : i32, i32
  }
  func.func @transform_3(%arg0: i32, %arg1: i32) -> (i32, i32, i32) {
    %c0_i32 = arith.constant 0 : i32
    %c0_i32_0 = arith.constant 0 : i32
    return %arg0, %c0_i32, %arg1 : i32, i32, i32
  }
}

</mosaic_0001>

<bundles_post_ra>
// kernel: tpu_custom_call.1
= control target key start
LH: loop header
LB: loop body
LE: loop exit
PB: predicated region body
PF: predicated region fallthrough
CT: control target
= control target key end

     0   :  { %8 = vsyncpa [#allocation3], 0  ;;  %s713_s0 = inlined_call_operand.hbm [shape: f32[2,4,256], index: 0, kind: input, shape index: {}]   ;;  %s714_s1 = inlined_call_operand.vmem [shape: bf16[8,4], index: 1, kind: input, shape index: {}]   ;;  %s715_s2 = inlined_call_operand.vmem [shape: f32[8,1], index: 2, kind: input, shape index: {}]   ;;  %s716_s3 = inlined_call_operand.hbm [shape: f32[2,8,256], index: 3, kind: output, shape index: {}]  }
   0x1   :  { %10 = vsyncpa [#allocation3 + $0x1], 0 }
   0x2   :  { %11 = vsyncpa [#allocation4], 0 }
   0x3   :  { %13 = vsyncpa [#allocation4 + $0x1], 0  ;;  %s586_s12 = smov 0   ;;  %s588_s13 = smov 0  }
   0x4   :  { %s590_s14 = smov 0   ;;  %s592_s15 = smov 0  }
   0x5   :  { %s594_s16 = smov 0   ;;  %s596_s17 = smov 0  }
   0x6 LB: > { %s368_s18 = sadd.s32 4294967295, %s563_s17   ;;  %s369_s19 = sadd.s32 4294967294, %s563_s17   ;;  %s563_s17 = sphi %s596_s17, %s19_s17   ;;  %s559_s16 = sphi %s594_s16, %s725_s16   ;;  %s555_s15 = sphi %s592_s15, %s724_s15   ;;  %s551_s14 = sphi %s590_s14, %s723_s14   ;;  %s547_s13 = sphi %s588_s13, %s722_s13   ;;  %s543_s12 = sphi %s586_s12, %s721_s12  }
   0x7   : > { %s31_s20 = sadd.s32 1, %s559_s16  ;;  %s40_s21 = sadd.s32 1, %s551_s14 }
   0x8   : > { %p33_p0 = scmp.ge.s32.totalorder %s31_s20, 2  ;;  %p47_p1 = scmp.ne.s32.totalorder %s551_s14, %s547_s13 }
   0x9   : > { %p48_p2 = scmp.eq.s32.totalorder %s563_s17, 0  ;;  %p53_p3 = scmp.ne.s32.totalorder %s547_s13, %s543_s12 }
   0xa   : > { %s727_s20 = smov (%p33_p0, %s31_s20), 0  ;;  %p54_p5 = scmp.eq.s32.totalorder %s368_s18, 0 }
   0xb   : > { %p627_p4 = por %p48_p2, %p47_p1  ;;  %s35_s23 = ssub.s32 %s559_s16, %s727_s20 }
   0xc   : > { %p121_p6 = scmp.eq.s32.totalorder %s368_s18, 1  ;;  %p38_p7 = scmp.eq.s32.totalorder %s35_s23, 0 }
   0xd   : > { %p633_p8 = por %p54_p5, %p53_p3  ;;  %p127_p10 = scmp.eq.s32.totalorder %s369_s19, 1 }
   0xe   : > { %p637_p9 = por %p121_p6, %p47_p1  ;;  %p371_p12 = scmp.ge.s32.totalorder %s563_s17, 2 }
   0xf   : > { %s642_s26 = scalar_select %p38_p7, %s551_s14, %s40_s21  }
  0x10   : > { %p644_p11 = por %p127_p10, %p53_p3  ;;  %p399_p13 = scmp.lt.s32.totalorder %s563_s17, 2 }
  0x11   : > { %s153_s28 = sand.u32 1, %s551_s14   ;;  %s385_s30 = sshll.u32 %s559_s16, 3 }
  0x12   : > { %s372_s29 = sshll.u32 %s153_s28, 3  ;;  %s164_s6 = scalar_lea.hbm %s713_s0, %s385_s30 }
  0x13   : > { %s157_s7 = scalar_lea.vmem [#allocation2], %s372_s29  ;;  %s166_s9 = sshll.u32 %s164_s6, 4  ;;  %s167_s9 = int_to_ptr.hbm [resolvable:$true] %s166_s9 }
  0x14   : > { %s168_s8 = sshll.u32 %s157_s7, 4  ;;  %p392_p0 = pnand %p399_p13, %p627_p4  ;;  %s169_s8 = int_to_ptr.vmem [resolvable:$true] %s168_s8 }
  0x15   : > { %p375_p1 = scmp.ge.s32.totalorder %s563_s17, 1  ;;  %p173_p2 = scmp.lt.s32.totalorder %s563_s17, 3 }
  0x16   : > { %s154_s10 = scalar_lea.sflag [#allocation3], %s153_s28 }
  0x17   : > { %394 = dma.hbm_to_vmem [thread:$0]  (!%p392_p0), %s167_s9, 128, %s169_s8, %s154_s10  }
  0x18   : > { %p174_p3 = pnand %p375_p1, %p173_p2 }
  0x19   : > { %s660_s11 = sand.u32 (!%p174_p3), 1, %s547_s13  }
  0x1a   : > { %177 = sbr.rel (%p174_p3) target bundleno = 181 (0xb5), region = 32  ;;  %s376_s18 = sshll.u32 (!%p174_p3), %s660_s11, 3 }
  0x1b   : > { %s180_s19 = scalar_lea.sflag (!%p174_p3), [#allocation3], %s660_s11  ;;  %s183_s21 = scalar_lea.vmem (!%p174_p3), [#allocation2], %s376_s18 }
  0x1f   : > { %534 = dma.done.wait (%p633_p8), %s180_s19, 128  }
  0x20   : > { %536 = vsyncadd (%p633_p8), %s180_s19, 4294967168  ;;  %v565_v0 = vmov 0   ;;  %v210_v1 = vld [vmem:[%s183_s21] sm:$0xff]  ;;  %v220_v2 = vld [vmem:[%s715_s2] sm:$0xff]  ;;  %vm230_vm0 = vcmask 1041408   ;;  %vm226_vm1 = vcmask 31744  }
  0x21   : > { %450 = vset.pattern.permute.xlu0 %v565_v0  ;;  %212 = vst [vmem:[#allocation1] ss:$2 sm:$0xff] %v210_v1  ;;  %v219_v9 = vld [vmem:[%s714_s1] sm:$0xf]  ;;  %s386_s29 = sshll.u32 %s555_s15, 4  ;;  %s377_s30 = sshll.u32 %s660_s11, 4 }
  0x22   : > { %223 = vperm.xlu0 %450, %v220_v2   ;;  %s279_s6 = scalar_lea.hbm %s716_s3, %s386_s29  ;;  %s206_s7 = scalar_lea.vmem [#allocation5], %s377_s30 }
  0x23   : > { %s281_s8 = sshll.u32 %s206_s7, 4  ;;  %s283_s9 = sshll.u32 %s279_s6, 4  ;;  %s282_s8 = int_to_ptr.vmem [resolvable:$true] %s281_s8  ;;  %s284_s9 = int_to_ptr.hbm [resolvable:$true] %s283_s9 }
  0x24   : > { %s266_s10 = scalar_lea.sflag [#allocation4], %s660_s11  ;;  %s495_s15 = sshra.s32 %s284_s9, 4  ;;  %s496_s15 = int_to_ptr.hbm [resolvable:$true] %s495_s15 }
  0x25   : > { %s497_s18 = scalar_lea.hbm %s496_s15, 16  ;;  %s501_s22 = scalar_lea.hbm %s716_s3, 32 }
  0x26   : > { %p498_p4 = scmp.ne.s32.totalorder %s496_s15, %s497_s18  ;;  %p502_p7 = scmp.lt.s32.totalorder %s496_s15, %s716_s3 }
  0x27   : > { %p503_p8 = scmp.lt.s32.totalorder %s501_s22, %s497_s18 }
  0x28   : > { %v213_v3 = vld.sshfl [vmem:[#allocation1] sm:$0xff pattern:$0x75316420]  ;;  %v214_v4 = vld.sshfl [vmem:[#allocation1 + $0x8] sm:$0xff pattern:$0x75316420]  ;;  %p499_p5 = pnand %p498_p4, %p637_p9 }
  0x29   : > { %v217_v5 = vpack.c.bf16 %v213_v3, %v213_v3  ;;  %v218_v6 = vpack.c.bf16 %v214_v4, %v214_v4  ;;  %p504_p10 = por %p503_p8, %p502_p7 }
  0x2a   : > { %p500_p6 = pneg %p499_p5 }
  0x2b   : > { %v232_v7 = vsel %vm230_vm0, %v217_v5, 0  ;;  %v235_v8 = vsel %vm230_vm0, %v218_v6, 0 }
  0x2c   : > { %244 = vmatpush.bf16.msra.mxu0 %v232_v7  ;;  %257 = vmatpush.bf16.msra.mxu1 %v235_v8  ;;  %p505_p13 = pnand %p504_p10, %p500_p6 }
  0x2f   : > { %378 = vmatmul.msk.bf16.vlgmr.msra.gmra.mxu0 %vm226_vm1, %v219_v9  ;;  %379 = vmatmul.msk.bf16.vlgmr.msra.gmra.mxu1 %vm226_vm1, %v219_v9 }
  0x94   : > { %v224_v10 = vpop.permute.xlu0 %223 }
  0xac   : > { %v246_v11 = vpop.f32.mrf.mxu0  ;;  %v259_v12 = vpop.f32.mrf.mxu1 }
  0xad   : > { %v247_v13 = vadd.f32 %v246_v11, %v224_v10  ;;  %v260_v14 = vadd.f32 %v259_v12, %v224_v10 }
  0xaf   : > { %263 = vst [vmem:[%s206_s7] sm:$0xff] %v247_v13 }
  0xb0   : > { %264 = vst [vmem:[%s206_s7 + $0x8] sm:$0xff] %v260_v14 }
  0xb1   : > { %508 = shalt.err (!%p505_p13)
}
  0xb2   : > { %389 = dma.vmem_to_hbm [thread:$0]  (%p637_p9), %s282_s8, 256, %s284_s9, %s266_s10  }
  0xb4   : > { %v248_v15 = vpop.f32.mrf.mxu0  ;;  %v261_v16 = vpop.f32.mrf.mxu1 }
  0xb5 PF: > { %s295_s11 = sand.u32 1, %s543_s12   ;;  %p396_p0 = pnand %p371_p12, %p644_p11 }
  0xb6   : > { %s296_s28 = scalar_lea.sflag [#allocation4], %s295_s11 }
  0xb7   : > { %p397_p1 = pneg %p396_p0 }
  0xb9   : > { %538 = dma.done.wait (%p397_p1), %s296_s28, 256  }
  0xba   : > { %540 = vsyncadd (%p397_p1), %s296_s28, 4294967040  ;;  %s19_s17 = sadd.s32 1, %s563_s17   ;;  %s721_s12 = smov %s547_s13 }
  0xbb   : > { %p16_p2 = scmp.ge.s32.totalorder %s19_s17, 4   ;;  %s722_s13 = smov %s551_s14 }
  0xbc   : > { %s723_s14 = smov %s642_s26  ;;  %s724_s15 = smov %s559_s16 }
  0xbd   : > { %s725_s16 = smov %s727_s20  ;;  %18 = sbr.rel (!%p16_p2) target bundleno = 6 (0x6), region = 77 }
  0xc2   :  { %302 = vsyncpa [#allocation3], 1 }
  0xc3   :  { %304 = vsyncpa [#allocation3 + $0x1], 1 }
  0xc4   :  { %305 = vsyncpa [#allocation4], 1 }
  0xc5   :  { %307 = vsyncpa [#allocation4 + $0x1], 1 }

</bundles_post_ra>
